<compile_context>
chip_gen: v5e
topology: v5e:2x2
jax: 0.10.0
libtpu: 0.0.40
codegen_flags: <defaults>
</compile_context>

<pallas_src>
import functools
import math

import jax
import jax.numpy as jnp
from jax.experimental import pallas as pl
from jax.experimental.pallas import tpu as pltpu


def _log_sigmoid(x):
    # Numerically stable log(sigmoid(x)) = min(x, 0) - log(1 + exp(-|x|)).
    return jnp.minimum(x, 0.0) - jnp.log(1.0 + jnp.exp(-jnp.abs(x)))


def dann_loss_kernel(f_s_ref, f_t_ref, w_s_ref, w_t_ref,
                     w1_ref, b1_ref, w2_ref, b2_ref,
                     out_ref, acc_s_ref, acc_t_ref,
                     *, inv_n_s, inv_n_t):
    step = pl.program_id(0)

    @pl.when(step == 0)
    def _init():
        acc_s_ref[...] = jnp.zeros_like(acc_s_ref)
        acc_t_ref[...] = jnp.zeros_like(acc_t_ref)

    # Discriminator parameters: resident across the whole grid.
    w1 = w1_ref[...]          # (F, H)
    b1 = b1_ref[...]          # (1, H)
    w2 = w2_ref[...]          # (1, H) lane-dense second-layer weights
    b2 = b2_ref[...]          # (1, 1)

    def logits(f_tile):
        # Linear(F,H) -> ReLU on the MXU/VPU.
        h = jnp.dot(f_tile, w1, preferred_element_type=jnp.float32) + b1
        h = jnp.maximum(h, 0.0)
        # Linear(H,1) as VPU multiply + lane (XLU) reduce: avoids a 1-column
        # MXU matmul that would fill 1/256 of the systolic array.
        return jnp.sum(h * w2, axis=-1, keepdims=True) + b2      # (TM, 1)

    # GRL forward is identity (input * 1.0); two domains share resident weights.
    z_s = logits(f_s_ref[...])
    z_t = logits(f_t_ref[...])

    # BCE(sigmoid(z), 1) = -log_sigmoid(z); BCE(sigmoid(z), 0) = -log_sigmoid(-z).
    # torch.nn.functional.binary_cross_entropy clamps the log terms at -100.
    term_s = -w_s_ref[...] * jnp.maximum(_log_sigmoid(z_s), -100.0)   # (TM, 1)
    term_t = -w_t_ref[...] * jnp.maximum(_log_sigmoid(-z_t), -100.0)  # (TM, 1)

    # Padded rows carry weight 0, so they contribute nothing to the sums.
    acc_s_ref[...] += jnp.sum(term_s, axis=0, keepdims=True)
    acc_t_ref[...] += jnp.sum(term_t, axis=0, keepdims=True)

    @pl.when(step == pl.num_programs(0) - 1)
    def _finalize():
        # reduction='mean': divide by the true element counts (static shapes).
        out_ref[...] = 0.5 * (acc_s_ref[...] * inv_n_s + acc_t_ref[...] * inv_n_t)


def domain_adversarial_loss(f_s, f_t, w1, b1, w2, b2, w_s=None, w_t=None,
                            *, max_tile=512):
    """0.5 * (BCE(D(f_s), 1, w_s, 'mean') + BCE(D(f_t), 0, w_t, 'mean'))."""
    n_s, feat = f_s.shape
    n_t = f_t.shape[0]
    hid = w1.shape[1]

    if w_s is None:
        w_s = jnp.ones((n_s,), jnp.float32)
    if w_t is None:
        w_t = jnp.ones((n_t,), jnp.float32)
    w_s = jnp.reshape(w_s, (n_s, 1)).astype(jnp.float32)
    w_t = jnp.reshape(w_t, (n_t, 1)).astype(jnp.float32)

    # Batch tile: cap at max_tile rows (512 default keeps v7x under its scoped
    # VMEM limit; use 1024-2048 on v5e/v6e). Pad both domains to a common
    # multiple of the tile; padded rows get weight 0 so they are ignored.
    n_max = max(n_s, n_t)
    if n_max <= max_tile:
        tm = ((n_max + 7) // 8) * 8
    else:
        tm = max_tile
    n_pad = ((n_max + tm - 1) // tm) * tm
    grid = (n_pad // tm,)

    def pad_rows(x, n):
        return jnp.pad(x, ((0, n_pad - n), (0, 0)))

    f_s_p = pad_rows(f_s.astype(jnp.float32), n_s)
    f_t_p = pad_rows(f_t.astype(jnp.float32), n_t)
    w_s_p = pad_rows(w_s, n_s)
    w_t_p = pad_rows(w_t, n_t)

    w1 = w1.astype(jnp.float32)                               # (F, H)
    b1 = jnp.reshape(b1, (1, hid)).astype(jnp.float32)        # (1, H)
    w2_row = jnp.reshape(w2, (1, hid)).astype(jnp.float32)    # lane-dense (1, H)
    b2 = jnp.reshape(b2, (1, 1)).astype(jnp.float32)          # (1, 1)

    feat_spec = pl.BlockSpec((tm, feat), lambda i: (i, 0))
    col_spec = pl.BlockSpec((tm, 1), lambda i: (i, 0))

    def resident(shape):
        return pl.BlockSpec(shape, lambda i, _s=shape: (0,) * len(_s))

    kernel = functools.partial(dann_loss_kernel,
                               inv_n_s=1.0 / n_s, inv_n_t=1.0 / n_t)

    out = pl.pallas_call(
        kernel,
        out_shape=jax.ShapeDtypeStruct((1, 1), jnp.float32),
        grid_spec=pltpu.PrefetchScalarGridSpec(
            num_scalar_prefetch=0,
            grid=grid,
            in_specs=[feat_spec, feat_spec, col_spec, col_spec,
                      resident(w1.shape), resident(b1.shape),
                      resident(w2_row.shape), resident(b2.shape)],
            out_specs=pl.BlockSpec((1, 1), lambda i: (0, 0)),
            scratch_shapes=[pltpu.VMEM((1, 1), jnp.float32),
                            pltpu.VMEM((1, 1), jnp.float32)],
        ),
        compiler_params=pltpu.CompilerParams(
            dimension_semantics=("arbitrary",)),
    )(f_s_p, f_t_p, w_s_p, w_t_p, w1, b1, w2_row, b2)
    return out[0, 0]


def _reference(f_s, f_t, w1, b1, w2, b2, w_s, w_t):
    # Pure-JAX mirror of the PyTorch module's forward (sigmoid -> log -> clamp).
    f = jnp.concatenate([f_s, f_t], axis=0)
    h = jnp.maximum(f @ w1 + b1, 0.0)
    d = jax.nn.sigmoid(h @ w2 + b2)
    n_s = f_s.shape[0]
    d_s, d_t = d[:n_s], d[n_s:]
    w_s = jnp.reshape(w_s, (-1, 1))
    w_t = jnp.reshape(w_t, (-1, 1))
    loss_s = jnp.mean(-w_s * jnp.maximum(jnp.log(d_s), -100.0))
    loss_t = jnp.mean(-w_t * jnp.maximum(jnp.log(1.0 - d_t), -100.0))
    return 0.5 * (loss_s + loss_t)


if __name__ == "__main__":
    key = jax.random.PRNGKey(0)
    k1, k2, k3, k4, k5, k6 = jax.random.split(key, 6)

    # Small shapes; uneven, non-multiple-of-8 batches exercise the padding path.
    N_S, N_T, F, H = 20, 12, 64, 32

    f_s = jax.random.normal(k1, (N_S, F), jnp.float32)
    f_t = jax.random.normal(k2, (N_T, F), jnp.float32)

    # Deterministic discriminator parameters (synthetic init, no checkpoint).
    w1 = jax.random.normal(k3, (F, H), jnp.float32) * (1.0 / math.sqrt(F))
    b1 = jnp.zeros((1, H), jnp.float32)
    w2 = jax.random.normal(k4, (H, 1), jnp.float32) * (1.0 / math.sqrt(H))
    b2 = jnp.zeros((1, 1), jnp.float32)

    # Per-instance rescaling weights (module defaults to ones if None).
    w_s = jax.random.uniform(k5, (N_S,), jnp.float32, minval=0.5, maxval=1.5)
    w_t = jax.random.uniform(k6, (N_T,), jnp.float32, minval=0.5, maxval=1.5)

    loss = domain_adversarial_loss(f_s, f_t, w1, b1, w2, b2, w_s, w_t)
    jax.block_until_ready(loss)

    ref = _reference(f_s, f_t, w1, b1, w2, b2, w_s, w_t)
    assert jnp.allclose(loss, ref, rtol=1e-5, atol=1e-5), (loss, ref)

    print("KERNEL_OK")
</pallas_src>

<mosaic_0001>
module attributes {stable_mosaic.version = 11 : i64} {
  func.func @dann_loss_kernel(%arg0: i32, %arg1: memref<24x64xf32, #tpu.memory_space<vmem>>, %arg2: memref<24x64xf32, #tpu.memory_space<vmem>>, %arg3: memref<24x1xf32, #tpu.memory_space<vmem>>, %arg4: memref<24x1xf32, #tpu.memory_space<vmem>>, %arg5: memref<64x32xf32, #tpu.memory_space<vmem>>, %arg6: memref<1x32xf32, #tpu.memory_space<vmem>>, %arg7: memref<1x32xf32, #tpu.memory_space<vmem>>, %arg8: memref<1x1xf32, #tpu.memory_space<vmem>>, %arg9: memref<1x1xf32, #tpu.memory_space<vmem>>, %arg10: memref<1x1xf32, #tpu.memory_space<vmem>>, %arg11: memref<1x1xf32, #tpu.memory_space<vmem>>) attributes {dimension_semantics = [#tpu.dimension_semantics<arbitrary>], iteration_bounds = array<i64: 1>, scalar_prefetch = 0 : i64, scratch_operands = 2 : i64, tpu.core_type = #tpu.core_type<tc>, window_params = [{transform_indices = @transform_0, window_bounds = array<i64: 24, 64>}, {transform_indices = @transform_1, window_bounds = array<i64: 24, 64>}, {transform_indices = @transform_2, window_bounds = array<i64: 24, 1>}, {transform_indices = @transform_3, window_bounds = array<i64: 24, 1>}, {pipeline_mode = #tpu.pipeline_mode<synchronous>, transform_indices = @transform_4, window_bounds = array<i64: 64, 32>}, {pipeline_mode = #tpu.pipeline_mode<synchronous>, transform_indices = @transform_5, window_bounds = array<i64: 1, 32>}, {pipeline_mode = #tpu.pipeline_mode<synchronous>, transform_indices = @transform_6, window_bounds = array<i64: 1, 32>}, {pipeline_mode = #tpu.pipeline_mode<synchronous>, transform_indices = @transform_7, window_bounds = array<i64: 1, 1>}, {pipeline_mode = #tpu.pipeline_mode<synchronous>, transform_indices = @transform_8, window_bounds = array<i64: 1, 1>}]} {
    %c0_i32 = arith.constant 0 : i32
    %0 = arith.cmpi eq, %arg0, %c0_i32 : i32
    %1 = arith.extui %0 : i1 to i32
    %c0_i32_0 = arith.constant 0 : i32
    %2 = arith.cmpi ne, %1, %c0_i32_0 : i32
    scf.if %2 {
      %cst_44 = arith.constant 0.000000e+00 : f32
      %78 = vector.broadcast %cst_44 : f32 to vector<1x1xf32>
      %c0_45 = arith.constant 0 : index
      %c0_46 = arith.constant 0 : index
      %79 = vector.load %arg10[%c0_45, %c0_46] : memref<1x1xf32, #tpu.memory_space<vmem>>, vector<1x1xf32>
      tpu.vector_store %arg10[%c0_45, %c0_46], %78 {strides = array<i32>} : memref<1x1xf32, #tpu.memory_space<vmem>>, vector<1x1xf32>,
      %cst_47 = arith.constant 0.000000e+00 : f32
      %80 = vector.broadcast %cst_47 : f32 to vector<1x1xf32>
      %c0_48 = arith.constant 0 : index
      %c0_49 = arith.constant 0 : index
      %81 = vector.load %arg11[%c0_48, %c0_49] : memref<1x1xf32, #tpu.memory_space<vmem>>, vector<1x1xf32>
      tpu.vector_store %arg11[%c0_48, %c0_49], %80 {strides = array<i32>} : memref<1x1xf32, #tpu.memory_space<vmem>>, vector<1x1xf32>,
    } else {
    }
    %c0 = arith.constant 0 : index
    %c0_1 = arith.constant 0 : index
    %3 = vector.load %arg5[%c0, %c0_1] : memref<64x32xf32, #tpu.memory_space<vmem>>, vector<64x32xf32>
    %c0_2 = arith.constant 0 : index
    %c0_3 = arith.constant 0 : index
    %4 = vector.load %arg6[%c0_2, %c0_3] : memref<1x32xf32, #tpu.memory_space<vmem>>, vector<1x32xf32>
    %c0_4 = arith.constant 0 : index
    %c0_5 = arith.constant 0 : index
    %5 = vector.load %arg7[%c0_4, %c0_5] : memref<1x32xf32, #tpu.memory_space<vmem>>, vector<1x32xf32>
    %c0_6 = arith.constant 0 : index
    %c0_7 = arith.constant 0 : index
    %6 = vector.load %arg8[%c0_6, %c0_7] : memref<1x1xf32, #tpu.memory_space<vmem>>, vector<1x1xf32>
    %c0_8 = arith.constant 0 : index
    %c0_9 = arith.constant 0 : index
    %7 = vector.load %arg1[%c0_8, %c0_9] : memref<24x64xf32, #tpu.memory_space<vmem>>, vector<24x64xf32>
    %cst = arith.constant dense<0.000000e+00> : vector<24x32xf32>
    %8 = tpu.matmul %7, %3, %cst {dimension_numbers = #tpu.dot_dimension_numbers<[1], [0], [0], [1], [0, 0, 1, 1], [], []>} : vector<24x64xf32>, vector<64x32xf32>, vector<24x32xf32> -> vector<24x32xf32>
    %9 = vector.broadcast %4 : vector<1x32xf32> to vector<24x32xf32>
    %10 = arith.addf %8, %9 : vector<24x32xf32>
    %cst_10 = arith.constant 0.000000e+00 : f32
    %11 = vector.broadcast %cst_10 : f32 to vector<24x32xf32>
    %12 = arith.maximumf %10, %11 : vector<24x32xf32>
    %13 = vector.broadcast %5 : vector<1x32xf32> to vector<24x32xf32>
    %14 = arith.mulf %12, %13 : vector<24x32xf32>
    %cst_11 = arith.constant dense<0.000000e+00> : vector<24xf32>
    %15 = vector.multi_reduction <add>, %14, %cst_11 [1] : vector<24x32xf32> to vector<24xf32>
    %16 = vector.shape_cast %15 : vector<24xf32> to vector<24x1xf32>
    %17 = vector.broadcast %6 : vector<1x1xf32> to vector<24x1xf32>
    %18 = arith.addf %16, %17 : vector<24x1xf32>
    %c0_12 = arith.constant 0 : index
    %c0_13 = arith.constant 0 : index
    %19 = vector.load %arg2[%c0_12, %c0_13] : memref<24x64xf32, #tpu.memory_space<vmem>>, vector<24x64xf32>
    %cst_14 = arith.constant dense<0.000000e+00> : vector<24x32xf32>
    %20 = tpu.matmul %19, %3, %cst_14 {dimension_numbers = #tpu.dot_dimension_numbers<[1], [0], [0], [1], [0, 0, 1, 1], [], []>} : vector<24x64xf32>, vector<64x32xf32>, vector<24x32xf32> -> vector<24x32xf32>
    %21 = vector.broadcast %4 : vector<1x32xf32> to vector<24x32xf32>
    %22 = arith.addf %20, %21 : vector<24x32xf32>
    %cst_15 = arith.constant 0.000000e+00 : f32
    %23 = vector.broadcast %cst_15 : f32 to vector<24x32xf32>
    %24 = arith.maximumf %22, %23 : vector<24x32xf32>
    %25 = vector.broadcast %5 : vector<1x32xf32> to vector<24x32xf32>
    %26 = arith.mulf %24, %25 : vector<24x32xf32>
    %cst_16 = arith.constant dense<0.000000e+00> : vector<24xf32>
    %27 = vector.multi_reduction <add>, %26, %cst_16 [1] : vector<24x32xf32> to vector<24xf32>
    %28 = vector.shape_cast %27 : vector<24xf32> to vector<24x1xf32>
    %29 = vector.broadcast %6 : vector<1x1xf32> to vector<24x1xf32>
    %30 = arith.addf %28, %29 : vector<24x1xf32>
    %c0_17 = arith.constant 0 : index
    %c0_18 = arith.constant 0 : index
    %31 = vector.load %arg3[%c0_17, %c0_18] : memref<24x1xf32, #tpu.memory_space<vmem>>, vector<24x1xf32>
    %cst_19 = arith.constant 0.000000e+00 : f32
    %32 = vector.broadcast %cst_19 : f32 to vector<24x1xf32>
    %33 = arith.subf %32, %31 : vector<24x1xf32>
    %cst_20 = arith.constant 0.000000e+00 : f32
    %34 = vector.broadcast %cst_20 : f32 to vector<24x1xf32>
    %35 = arith.minimumf %18, %34 : vector<24x1xf32>
    %36 = math.absf %18 : vector<24x1xf32>
    %cst_21 = arith.constant 0.000000e+00 : f32
    %37 = vector.broadcast %cst_21 : f32 to vector<24x1xf32>
    %38 = arith.subf %37, %36 : vector<24x1xf32>
    %39 = math.exp %38 : vector<24x1xf32>
    %cst_22 = arith.constant 1.000000e+00 : f32
    %40 = vector.broadcast %cst_22 : f32 to vector<24x1xf32>
    %41 = arith.addf %40, %39 : vector<24x1xf32>
    %42 = math.log %41 : vector<24x1xf32>
    %43 = arith.subf %35, %42 : vector<24x1xf32>
    %cst_23 = arith.constant -1.000000e+02 : f32
    %44 = vector.broadcast %cst_23 : f32 to vector<24x1xf32>
    %45 = arith.maximumf %43, %44 : vector<24x1xf32>
    %46 = arith.mulf %33, %45 : vector<24x1xf32>
    %c0_24 = arith.constant 0 : index
    %c0_25 = arith.constant 0 : index
    %47 = vector.load %arg4[%c0_24, %c0_25] : memref<24x1xf32, #tpu.memory_space<vmem>>, vector<24x1xf32>
    %cst_26 = arith.constant 0.000000e+00 : f32
    %48 = vector.broadcast %cst_26 : f32 to vector<24x1xf32>
    %49 = arith.subf %48, %47 : vector<24x1xf32>
    %cst_27 = arith.constant 0.000000e+00 : f32
    %50 = vector.broadcast %cst_27 : f32 to vector<24x1xf32>
    %51 = arith.subf %50, %30 : vector<24x1xf32>
    %cst_28 = arith.constant 0.000000e+00 : f32
    %52 = vector.broadcast %cst_28 : f32 to vector<24x1xf32>
    %53 = arith.minimumf %51, %52 : vector<24x1xf32>
    %54 = math.absf %51 : vector<24x1xf32>
    %cst_29 = arith.constant 0.000000e+00 : f32
    %55 = vector.broadcast %cst_29 : f32 to vector<24x1xf32>
    %56 = arith.subf %55, %54 : vector<24x1xf32>
    %57 = math.exp %56 : vector<24x1xf32>
    %cst_30 = arith.constant 1.000000e+00 : f32
    %58 = vector.broadcast %cst_30 : f32 to vector<24x1xf32>
    %59 = arith.addf %58, %57 : vector<24x1xf32>
    %60 = math.log %59 : vector<24x1xf32>
    %61 = arith.subf %53, %60 : vector<24x1xf32>
    %cst_31 = arith.constant -1.000000e+02 : f32
    %62 = vector.broadcast %cst_31 : f32 to vector<24x1xf32>
    %63 = arith.maximumf %61, %62 : vector<24x1xf32>
    %64 = arith.mulf %49, %63 : vector<24x1xf32>
    %c0_32 = arith.constant 0 : index
    %c0_33 = arith.constant 0 : index
    %65 = vector.load %arg10[%c0_32, %c0_33] : memref<1x1xf32, #tpu.memory_space<vmem>>, vector<1x1xf32>
    %cst_34 = arith.constant dense<0.000000e+00> : vector<1xf32>
    %66 = vector.multi_reduction <add>, %46, %cst_34 [0] : vector<24x1xf32> to vector<1xf32>
    %67 = vector.shape_cast %66 : vector<1xf32> to vector<1x1xf32>
    %68 = arith.addf %65, %67 : vector<1x1xf32>
    %c0_35 = arith.constant 0 : index
    %c0_36 = arith.constant 0 : index
    %69 = vector.load %arg10[%c0_35, %c0_36] : memref<1x1xf32, #tpu.memory_space<vmem>>, vector<1x1xf32>
    tpu.vector_store %arg10[%c0_35, %c0_36], %68 {strides = array<i32>} : memref<1x1xf32, #tpu.memory_space<vmem>>, vector<1x1xf32>,
    %c0_37 = arith.constant 0 : index
    %c0_38 = arith.constant 0 : index
    %70 = vector.load %arg11[%c0_37, %c0_38] : memref<1x1xf32, #tpu.memory_space<vmem>>, vector<1x1xf32>
    %cst_39 = arith.constant dense<0.000000e+00> : vector<1xf32>
    %71 = vector.multi_reduction <add>, %64, %cst_39 [0] : vector<24x1xf32> to vector<1xf32>
    %72 = vector.shape_cast %71 : vector<1xf32> to vector<1x1xf32>
    %73 = arith.addf %70, %72 : vector<1x1xf32>
    %c0_40 = arith.constant 0 : index
    %c0_41 = arith.constant 0 : index
    %74 = vector.load %arg11[%c0_40, %c0_41] : memref<1x1xf32, #tpu.memory_space<vmem>>, vector<1x1xf32>
    tpu.vector_store %arg11[%c0_40, %c0_41], %73 {strides = array<i32>} : memref<1x1xf32, #tpu.memory_space<vmem>>, vector<1x1xf32>,
    %c0_i32_42 = arith.constant 0 : i32
    %75 = arith.cmpi eq, %arg0, %c0_i32_42 : i32
    %76 = arith.extui %75 : i1 to i32
    %c0_i32_43 = arith.constant 0 : i32
    %77 = arith.cmpi ne, %76, %c0_i32_43 : i32
    scf.if %77 {
      %c0_44 = arith.constant 0 : index
      %c0_45 = arith.constant 0 : index
      %78 = vector.load %arg10[%c0_44, %c0_45] : memref<1x1xf32, #tpu.memory_space<vmem>>, vector<1x1xf32>
      %cst_46 = arith.constant 5.000000e-02 : f32
      %79 = vector.broadcast %cst_46 : f32 to vector<1x1xf32>
      %80 = arith.mulf %78, %79 : vector<1x1xf32>
      %c0_47 = arith.constant 0 : index
      %c0_48 = arith.constant 0 : index
      %81 = vector.load %arg11[%c0_47, %c0_48] : memref<1x1xf32, #tpu.memory_space<vmem>>, vector<1x1xf32>
      %cst_49 = arith.constant 0.0833333358 : f32
      %82 = vector.broadcast %cst_49 : f32 to vector<1x1xf32>
      %83 = arith.mulf %81, %82 : vector<1x1xf32>
      %84 = arith.addf %80, %83 : vector<1x1xf32>
      %cst_50 = arith.constant 5.000000e-01 : f32
      %85 = vector.broadcast %cst_50 : f32 to vector<1x1xf32>
      %86 = arith.mulf %85, %84 : vector<1x1xf32>
      %c0_51 = arith.constant 0 : index
      %c0_52 = arith.constant 0 : index
      %87 = vector.load %arg9[%c0_51, %c0_52] : memref<1x1xf32, #tpu.memory_space<vmem>>, vector<1x1xf32>
      tpu.vector_store %arg9[%c0_51, %c0_52], %86 {strides = array<i32>} : memref<1x1xf32, #tpu.memory_space<vmem>>, vector<1x1xf32>,
    } else {
    }
    return
  }
  func.func @transform_0(%arg0: i32) -> (i32, i32) {
    %c0_i32 = arith.constant 0 : i32
    %c0_i32_0 = arith.constant 0 : i32
    return %arg0, %c0_i32 : i32, i32
  }
  func.func @transform_1(%arg0: i32) -> (i32, i32) {
    %c0_i32 = arith.constant 0 : i32
    %c0_i32_0 = arith.constant 0 : i32
    return %arg0, %c0_i32 : i32, i32
  }
  func.func @transform_2(%arg0: i32) -> (i32, i32) {
    %c0_i32 = arith.constant 0 : i32
    %c0_i32_0 = arith.constant 0 : i32
    return %arg0, %c0_i32 : i32, i32
  }
  func.func @transform_3(%arg0: i32) -> (i32, i32) {
    %c0_i32 = arith.constant 0 : i32
    %c0_i32_0 = arith.constant 0 : i32
    return %arg0, %c0_i32 : i32, i32
  }
  func.func @transform_4(%arg0: i32) -> (i32, i32) {
    %c0_i32 = arith.constant 0 : i32
    %c0_i32_0 = arith.constant 0 : i32
    %c0_i32_1 = arith.constant 0 : i32
    return %c0_i32, %c0_i32_0 : i32, i32
  }
  func.func @transform_5(%arg0: i32) -> (i32, i32) {
    %c0_i32 = arith.constant 0 : i32
    %c0_i32_0 = arith.constant 0 : i32
    %c0_i32_1 = arith.constant 0 : i32
    return %c0_i32, %c0_i32_0 : i32, i32
  }
  func.func @transform_6(%arg0: i32) -> (i32, i32) {
    %c0_i32 = arith.constant 0 : i32
    %c0_i32_0 = arith.constant 0 : i32
    %c0_i32_1 = arith.constant 0 : i32
    return %c0_i32, %c0_i32_0 : i32, i32
  }
  func.func @transform_7(%arg0: i32) -> (i32, i32) {
    %c0_i32 = arith.constant 0 : i32
    %c0_i32_0 = arith.constant 0 : i32
    %c0_i32_1 = arith.constant 0 : i32
    return %c0_i32, %c0_i32_0 : i32, i32
  }
  func.func @transform_8(%arg0: i32) -> (i32, i32) {
    %c0_i32 = arith.constant 0 : i32
    %c0_i32_0 = arith.constant 0 : i32
    %c0_i32_1 = arith.constant 0 : i32
    return %c0_i32, %c0_i32_0 : i32, i32
  }
}

</mosaic_0001>

<bundles_post_ra>
// kernel: tpu_custom_call.1
= control target key start
LH: loop header
LB: loop body
LE: loop exit
PB: predicated region body
PF: predicated region fallthrough
CT: control target
= control target key end

     0   :  { %s544_s0 = inlined_call_operand.vmem [shape: f32[24,64], index: 0, kind: input, shape index: {}]   ;;  %s545_s1 = inlined_call_operand.vmem [shape: f32[24,64], index: 1, kind: input, shape index: {}]   ;;  %s546_s2 = inlined_call_operand.vmem [shape: f32[24,1], index: 2, kind: input, shape index: {}]   ;;  %s547_s3 = inlined_call_operand.vmem [shape: f32[24,1], index: 3, kind: input, shape index: {}]   ;;  %s548_s4 = inlined_call_operand.vmem [shape: f32[64,32], index: 4, kind: input, shape index: {}]   ;;  %s549_s5 = inlined_call_operand.vmem [shape: f32[1,32], index: 5, kind: input, shape index: {}]   ;;  %s550_s6 = inlined_call_operand.vmem [shape: f32[1,32], index: 6, kind: input, shape index: {}]   ;;  %s551_s7 = inlined_call_operand.<no memory space> [shape: f32[1,1], index: 7, kind: input, shape index: {}]   ;;  %s552_s8 = inlined_call_operand.hbm [shape: f32[1,1], index: 8, kind: output, shape index: {}]  }
   0x1   :  { %v13_v0 = vstv %s551_s7 }
   0x2   :  { %14 = vst [vmem:[#allocation4] sm:$0x1] %v13_v0 }
   0x3   :  { %v46_v1 = vld [vmem:[%s548_s4 + $0x38] sm:$0xff]  ;;  %v45_v2 = vld [vmem:[%s548_s4 + $0x30] sm:$0xff]  ;;  %v44_v3 = vld [vmem:[%s548_s4 + $0x28] sm:$0xff] }
   0x4   :  { %74 = vmatpush.msra.mxu0 %v46_v1  ;;  %137 = vmatpush.msra.mxu1 %v46_v1  ;;  %v43_v4 = vld [vmem:[%s548_s4 + $0x20] sm:$0xff]  ;;  %v42_v5 = vld [vmem:[%s548_s4 + $0x18] sm:$0xff] }
   0x5   :  { %324 = vmatpush.msra.mxu3 %v46_v1  ;;  %316 = vmatpush.msra.mxu2 %v46_v1 }
   0x6   :  { %75 = vmatpush.msra.mxu0 %v45_v2  ;;  %138 = vmatpush.msra.mxu1 %v45_v2 }
   0x7   :  { %325 = vmatpush.msra.mxu3 %v45_v2  ;;  %317 = vmatpush.msra.mxu2 %v45_v2 }
   0x8   :  { %76 = vmatpush.msra.mxu0 %v44_v3  ;;  %139 = vmatpush.msra.mxu1 %v44_v3 }
   0x9   :  { %326 = vmatpush.msra.mxu3 %v44_v3  ;;  %318 = vmatpush.msra.mxu2 %v44_v3 }
   0xa   :  { %15 = vsyncpa [#allocation6], 0  ;;  %77 = vmatpush.msra.mxu0 %v43_v4  ;;  %140 = vmatpush.msra.mxu1 %v43_v4  ;;  %v41_v6 = vld [vmem:[%s548_s4 + $0x10] sm:$0xff]  ;;  %v40_v7 = vld [vmem:[%s548_s4 + $0x8] sm:$0xff]  ;;  %vm56_vm0 = vcmask 523264   ;;  %vm101_vm1 = vcmask 261120  }
   0xb   :  { %327 = vmatpush.msra.mxu3 %v43_v4  ;;  %319 = vmatpush.msra.mxu2 %v43_v4  ;;  %v39_v8 = vld [vmem:[%s548_s4] sm:$0xff]  ;;  %v118_v11 = vld [vmem:[%s545_s1 + $0x8] sm:$0xff]  ;;  %v119_v13 = vld [vmem:[%s545_s1 + $0x10] sm:$0xff]  ;;  %vm36_vm2 = vcmask 0   ;;  %vm255_vm3 = vcmask 7168   ;;  %s301_s24 = sshll.u32 %s552_s8, 4  ;;  %s302_s24 = int_to_ptr.hbm [resolvable:$true] %s301_s24 }
   0xc   :  { %78 = vmatpush.msra.mxu0 %v42_v5  ;;  %141 = vmatpush.msra.mxu1 %v42_v5  ;;  %v50_v9 = vld [vmem:[%s544_s0] sm:$0xff]  ;;  %v51_v12 = vld [vmem:[%s544_s0 + $0x8] sm:$0xff]  ;;  %v52_v14 = vld [vmem:[%s544_s0 + $0x10] sm:$0xff] }
   0xd   :  { %328 = vmatpush.msra.mxu3 %v42_v5  ;;  %320 = vmatpush.msra.mxu2 %v42_v5  ;;  %v117_v10 = vld [vmem:[%s545_s1] sm:$0xff] }
   0xe   :  { %79 = vmatpush.msra.mxu0 %v41_v6  ;;  %142 = vmatpush.msra.mxu1 %v41_v6  ;;  %v334_v15 = vld [vmem:[%s549_s5] ss:$0 sm:$0xff]  ;;  %v336_v47 = vld [vmem:[#allocation4] ss:$0 sm:$0xff] }
   0xf   :  { %329 = vmatpush.msra.mxu3 %v41_v6  ;;  %321 = vmatpush.msra.mxu2 %v41_v6  ;;  %v335_v19 = vld [vmem:[%s550_s6] ss:$0 sm:$0xff] }
  0x10   :  { %80 = vmatpush.msra.mxu0 %v40_v7  ;;  %143 = vmatpush.msra.mxu1 %v40_v7 }
  0x11   :  { %330 = vmatpush.msra.mxu3 %v40_v7  ;;  %322 = vmatpush.msra.mxu2 %v40_v7 }
  0x12   :  { %81 = vmatpush.msra.mxu0 %v39_v8  ;;  %144 = vmatpush.msra.mxu1 %v39_v8 }
  0x13   :  { %331 = vmatpush.msra.mxu3 %v39_v8  ;;  %310 = vmatmul.msk.f32.vlgmr.msra.gmra.mxu0 %vm56_vm0, %v50_v9 }
  0x14   :  { %313 = vmatmul.msk.f32.vlgmr.msra.gmra.mxu1 %vm56_vm0, %v117_v10  ;;  %314 = vmatmul.msk.f32.vlgmr.msra.gmra.mxu3 %vm56_vm0, %v118_v11 }
  0x15   :  { %323 = vmatpush.msra.mxu2 %v39_v8 }
  0x16   :  { %311 = vmatmul.msk.f32.vlgmr.msra.gmra.mxu2 %vm56_vm0, %v51_v12 }
  0x1c   :  { %315 = vmatmul.msk.f32.gmra.mxu3 %vm56_vm0, %v119_v13 }
  0x1e   :  { %312 = vmatmul.msk.f32.gmra.mxu2 %vm56_vm0, %v52_v14 }
  0x90   :  { %v83_v16 = vpop.f32.mrf.mxu0 }
  0x91   :  { %v84_v17 = vadd.f32 %v334_v15, %v83_v16  ;;  %v146_v18 = vpop.f32.mrf.mxu1 }
  0x92   :  { %v147_v20 = vadd.f32 %v334_v15, %v146_v18 }
  0x93   :  { %v92_v21 = vmax.f32 %v84_v17, 0.0 }
  0x94   :  { %v155_v22 = vmax.f32 %v147_v20, 0.0 }
  0x95   :  { %v98_v23 = vmul.f32 %v335_v19, %v92_v21 }
  0x96   :  { %v158_v24 = vmul.f32 %v335_v19, %v155_v22  ;;  %v387_v22 = vmov 0.0  }
  0x97   :  { %v149_v25 = vpop.f32.mrf.mxu3  ;;  %v102_v26 = vsel %vm101_vm1, %v98_v23, 0.0  ;;  %37 = vst.msk [vmem:[#allocation2] sm:$0x1] %vm36_vm2, %v387_v22 }
  0x98   :  { %v150_v27 = vadd.f32 %v334_v15, %v149_v25  ;;  %v161_v28 = vsel %vm101_vm1, %v158_v24, 0.0  ;;  %103 = vadd.xlane.f32.xlu1 %v102_v26  ;;  %38 = vst.msk [vmem:[#allocation3] sm:$0x1] %vm36_vm2, %v387_v22 }
  0x99   :  { %162 = vadd.xlane.f32.xlu0 %v161_v28  ;;  %v86_v29 = vpop.f32.mrf.mxu2 }
  0x9a   :  { %v156_v30 = vmax.f32 %v150_v27, 0.0  ;;  %v87_v31 = vadd.f32 %v334_v15, %v86_v29 }
  0x9c   :  { %v93_v32 = vmax.f32 %v87_v31, 0.0  ;;  %v159_v33 = vmul.f32 %v335_v19, %v156_v30 }
  0x9e   :  { %v99_v34 = vmul.f32 %v335_v19, %v93_v32  ;;  %v164_v37 = vsel %vm101_vm1, %v159_v33, 0.0 }
  0x9f   :  { %v152_v35 = vpop.f32.mrf.mxu3 }
  0xa0   :  { %v153_v36 = vadd.f32 %v334_v15, %v152_v35  ;;  %v105_v38 = vsel %vm101_vm1, %v99_v34, 0.0  ;;  %v213_v34 = vld [vmem:[%s547_s3 + $0x8] sm:$0xff]  ;;  %v212_v35 = vld [vmem:[%s547_s3] sm:$0xff] }
  0xa1   :  { %165 = vadd.xlane.f32.xlu0 %v164_v37  ;;  %106 = vadd.xlane.f32.xlu1 %v105_v38  ;;  %v89_v39 = vpop.f32.mrf.mxu2 }
  0xa2   :  { %v157_v40 = vmax.f32 %v153_v36, 0.0  ;;  %v90_v41 = vadd.f32 %v334_v15, %v89_v39 }
  0xa4   :  { %v160_v42 = vmul.f32 %v335_v19, %v157_v40  ;;  %v94_v43 = vmax.f32 %v90_v41, 0.0 }
  0xa6   :  { %v167_v44 = vsel %vm101_vm1, %v160_v42, 0.0  ;;  %v100_v45 = vmul.f32 %v335_v19, %v94_v43  ;;  %v216_v42 = vsub.f32 0.0, %v213_v34 }
  0xa7   :  { %168 = vadd.xlane.f32.xlu2 %v167_v44 }
  0xa8   :  { %v108_v46 = vsel %vm101_vm1, %v100_v45, 0.0  ;;  %v215_v45 = vsub.f32 0.0, %v212_v35 }
  0xaf   :  { %109 = vadd.xlane.f32.xlu2 %v108_v46 }
 0x10b   :  { %v104_v48 = vpop.xlane.xlu1 %103 }
 0x10c   :  { %v163_v49 = vpop.xlane.xlu0 %162  ;;  %v497_v50 = vadd.f32 %v336_v47, %v104_v48 }
 0x10d   :  { %v170_v51 = vadd.f32 %v336_v47, %v163_v49 }
 0x10e   :  { %v182_v52 = vand.u32 2147483647, %v497_v50  ;;  %v179_v48 = vmin.f32 %v497_v50, 0.0  ;;  %v173_v50 = vld [vmem:[%s546_s2] sm:$0xff] }
 0x10f   :  { %v218_v53 = vsub.f32 0.0, %v170_v51  ;;  %v174_v51 = vld [vmem:[%s546_s2 + $0x8] sm:$0xff] }
 0x110   :  { %v185_v55 = vsub.f32 0.0, %v182_v52 }
 0x111   :  { %v224_v54 = vand.u32 2147483647, %v218_v53  ;;  %v221_v32 = vmin.f32 %v218_v53, 0.0 }
 0x112   :  { %v188_v60 = vmul.f32 1.442695, %v185_v55 }
 0x113   :  { %v227_v56 = vsub.f32 0.0, %v224_v54  ;;  %v214_v54 = vld [vmem:[%s547_s3 + $0x10] sm:$0xff] }
 0x114   :  { %v166_v57 = vpop.xlane.xlu0 %165  ;;  %v107_v58 = vpop.xlane.xlu1 %106 }
 0x115   :  { %v230_v59 = vmul.f32 1.442695, %v227_v56  ;;  %v171_v61 = vadd.f32 %v336_v47, %v166_v57  ;;  %v500_v62 = vadd.f32 %v336_v47, %v107_v58 }
 0x117   :  { %337 = vpow2.f32 %v230_v59  ;;  %v219_v63 = vsub.f32 0.0, %v171_v61  ;;  %v183_v0 = vand.u32 2147483647, %v500_v62  ;;  %v180_v44 = vmin.f32 %v500_v62, 0.0 }
 0x118   :  { %339 = vpow2.f32 %v188_v60  ;;  %v177_v59 = vsub.f32 0.0, %v174_v51  ;;  %v217_v62 = vsub.f32 0.0, %v214_v54 }
 0x119   :  { %v225_v1 = vand.u32 2147483647, %v219_v63  ;;  %v186_v2 = vsub.f32 0.0, %v183_v0  ;;  %v222_v37 = vmin.f32 %v219_v63, 0.0  ;;  %v176_v0 = vsub.f32 0.0, %v173_v50 }
 0x11a   :  { %v169_v3 = vpop.xlane.xlu2 %168 }
 0x11b   :  { %v228_v4 = vsub.f32 0.0, %v225_v1  ;;  %v190_v5 = vmul.f32 1.442695, %v186_v2  ;;  %v503_v6 = vadd.f32 %v336_v47, %v169_v3 }
 0x11d   :  { %v338_v7 = vpop.eup %337  ;;  %v232_v8 = vmul.f32 1.442695, %v228_v4  ;;  %v220_v9 = vsub.f32 0.0, %v503_v6  ;;  %341 = vpow2.f32 %v190_v5  ;;  %v175_v5 = vld [vmem:[%s546_s2 + $0x10] sm:$0xff]  ;;  %s388_s2 = smov [#allocation5]  }
 0x11e   :  { %v236_v10 = vadd.f32 1.0, %v338_v7  ;;  %v340_v11 = vpop.eup %339  ;;  %s299_s21 = sshll.u32 %s388_s2, 4  ;;  %s300_s21 = int_to_ptr.vmem [resolvable:$true] %s299_s21 }
 0x11f   :  { %343 = vpow2.f32 %v232_v8  ;;  %v226_v12 = vand.u32 2147483647, %v220_v9  ;;  %v194_v14 = vadd.f32 1.0, %v340_v11  ;;  %v223_v57 = vmin.f32 %v220_v9, 0.0 }
 0x120   :  { %345 = vlog2.f32 %v236_v10 }
 0x121   :  { %v229_v13 = vsub.f32 0.0, %v226_v12 }
 0x122   :  { %v110_v15 = vpop.xlane.xlu2 %109 }
 0x123   :  { %v234_v16 = vmul.f32 1.442695, %v229_v13  ;;  %v506_v17 = vadd.f32 %v336_v47, %v110_v15  ;;  %v342_v18 = vpop.eup %341 }
 0x124   :  { %v195_v20 = vadd.f32 1.0, %v342_v18 }
 0x125   :  { %v344_v19 = vpop.eup %343  ;;  %347 = vpow2.f32 %v234_v16  ;;  %v184_v21 = vand.u32 2147483647, %v506_v17  ;;  %v181_v6 = vmin.f32 %v506_v17, 0.0 }
 0x126   :  { %349 = vlog2.f32 %v194_v14  ;;  %v237_v23 = vadd.f32 1.0, %v344_v19  ;;  %v346_v25 = vpop.eup %345  ;;  %v178_v14 = vsub.f32 0.0, %v175_v5 }
 0x127   :  { %351 = vlog2.f32 %v195_v20  ;;  %v187_v24 = vsub.f32 0.0, %v184_v21  ;;  %v240_v28 = vmul.f32 0.6931472, %v346_v25 }
 0x128   :  { %353 = vlog2.f32 %v237_v23 }
 0x129   :  { %v192_v26 = vmul.f32 1.442695, %v187_v24  ;;  %v245_v36 = vsub.f32 %v221_v32, %v240_v28 }
 0x12b   :  { %v348_v27 = vpop.eup %347  ;;  %355 = vpow2.f32 %v192_v26  ;;  %v248_v47 = vmax.f32 %v245_v36, -100.0 }
 0x12c   :  { %v350_v29 = vpop.eup %349  ;;  %v238_v30 = vadd.f32 1.0, %v348_v27 }
 0x12d   :  { %v352_v31 = vpop.eup %351  ;;  %v198_v41 = vmul.f32 0.6931472, %v350_v29  ;;  %v251_v60 = vmul.f32 %v248_v47, %v215_v45 }
 0x12e   :  { %v354_v33 = vpop.eup %353  ;;  %357 = vlog2.f32 %v238_v30  ;;  %v200_v39 = vmul.f32 0.6931472, %v352_v31  ;;  %v270_v31 = vld [vmem:[#allocation3] sm:$0x1] }
 0x12f   :  { %v242_v38 = vmul.f32 0.6931472, %v354_v33  ;;  %v203_v55 = vsub.f32 %v179_v48, %v198_v41  ;;  %v271_v7 = vsel %vm255_vm3, %v251_v60, 0.0 }
 0x130   :  { %v204_v52 = vsub.f32 %v180_v44, %v200_v39 }
 0x131   :  { %v356_v40 = vpop.eup %355  ;;  %v246_v43 = vsub.f32 %v222_v37, %v242_v38  ;;  %v206_v1 = vmax.f32 %v203_v55, -100.0  ;;  %v254_v37 = vld [vmem:[#allocation2] sm:$0x1] }
 0x132   :  { %v196_v46 = vadd.f32 1.0, %v356_v40  ;;  %v207_v61 = vmax.f32 %v204_v52, -100.0 }
 0x133   :  { %v249_v49 = vmax.f32 %v246_v43, -100.0  ;;  %v209_v12 = vmul.f32 %v206_v1, %v176_v0 }
 0x134   :  { %v358_v53 = vpop.eup %357  ;;  %359 = vlog2.f32 %v196_v46  ;;  %v210_v8 = vmul.f32 %v207_v61, %v177_v59 }
 0x135   :  { %v252_v56 = vmul.f32 %v249_v49, %v216_v42  ;;  %v244_v58 = vmul.f32 0.6931472, %v358_v53  ;;  %v256_v21 = vsel %vm255_vm3, %v209_v12, 0.0 }
 0x136   :  { %v257_v18 = vsel %vm255_vm3, %v210_v8, 0.0 }
 0x137   :  { %v247_v63 = vsub.f32 %v223_v57, %v244_v58  ;;  %v272_v2 = vsel %vm255_vm3, %v252_v56, 0.0  ;;  %v258_v17 = vadd.f32 %v257_v18, %v256_v21 }
 0x138   :  { %v273_v11 = vadd.f32 %v272_v2, %v271_v7 }
 0x139   :  { %v250_v3 = vmax.f32 %v247_v63, -100.0 }
 0x13a   :  { %v360_v4 = vpop.eup %359 }
 0x13b   :  { %v253_v9 = vmul.f32 %v250_v3, %v217_v62  ;;  %v202_v10 = vmul.f32 0.6931472, %v360_v4 }
 0x13d   :  { %v274_v13 = vsel %vm255_vm3, %v253_v9, 0.0  ;;  %v205_v15 = vsub.f32 %v181_v6, %v202_v10 }
 0x13e   :  { %v275_v16 = vadd.f32 %v274_v13, %v273_v11 }
 0x13f   :  { %v208_v19 = vmax.f32 %v205_v15, -100.0 }
 0x140   :  { %v276_v20 = vrot.slane %v275_v16, 4 }
 0x141   :  { %v211_v22 = vmul.f32 %v208_v19, %v178_v14 }
 0x142   :  { %v277_v23 = vadd.f32 %v276_v20, %v275_v16 }
 0x143   :  { %v259_v24 = vsel %vm255_vm3, %v211_v22, 0.0 }
 0x144   :  { %v278_v25 = vrot.slane %v277_v23, 2  ;;  %v260_v26 = vadd.f32 %v259_v24, %v258_v17 }
 0x146   :  { %v279_v27 = vadd.f32 %v278_v25, %v277_v23  ;;  %v261_v28 = vrot.slane %v260_v26, 4 }
 0x148   :  { %v280_v29 = vrot.slane %v279_v27, 1  ;;  %v262_v30 = vadd.f32 %v261_v28, %v260_v26 }
 0x14a   :  { %v281_v32 = vadd.f32 %v280_v29, %v279_v27  ;;  %v263_v33 = vrot.slane %v262_v30, 2 }
 0x14c   :  { %v264_v34 = vadd.f32 %v263_v33, %v262_v30  ;;  %v282_v35 = vadd.f32 %v281_v32, %v270_v31 }
 0x14e   :  { %v265_v36 = vrot.slane %v264_v34, 1  ;;  %283 = vst.msk [vmem:[#allocation3] sm:$0x1] %vm36_vm2, %v282_v35 }
 0x150   :  { %v266_v38 = vadd.f32 %v265_v36, %v264_v34 }
 0x152   :  { %v267_v39 = vadd.f32 %v266_v38, %v254_v37 }
 0x154   :  { %269 = vst.msk [vmem:[#allocation2] sm:$0x1] %vm36_vm2, %v267_v39 }
 0x155   :  { %v289_v40 = vld [vmem:[#allocation3] sm:$0x1] }
 0x156   :  { %v290_v43 = vmul.f32 0.083333336, %v289_v40 }
 0x15b   :  { %v287_v41 = vld [vmem:[#allocation2] sm:$0x1] }
 0x15c   :  { %v288_v42 = vmul.f32 0.05, %v287_v41 }
 0x15e   :  { %v291_v44 = vadd.f32 %v290_v43, %v288_v42 }
 0x160   :  { %v292_v45 = vmul.f32 0.5, %v291_v44 }
 0x162   :  { %293 = vst.msk [vmem:[#allocation5] sm:$0x1] %vm36_vm2, %v292_v45 }
 0x163   :  { %304 = dma.vmem_to_hbm [thread:$0]  %s300_s21, 16, %s302_s24, [#allocation6]  }
 0x164   :  { %385 = dma.done.wait [#allocation6], 16  }
 0x165   :  { %386 = vsyncadd [#allocation6], 4294967280 }
 0x166   :  { %309 = vsyncpa [#allocation6], 1 }

</bundles_post_ra>
